<compile_context>
chip_gen: v7x
topology: tpu7x:2x2x1
jax: 0.10.0
libtpu: 0.0.40
codegen_flags: <defaults>
</compile_context>

<pallas_src>
import functools

import jax
import jax.numpy as jnp
from jax.experimental import pallas as pl
from jax.experimental.pallas import tpu as pltpu


def _round_up(x, m):
    return (x + m - 1) // m * m


def _cdiv(a, b):
    return -(-a // b)


@functools.lru_cache(maxsize=None)
def _vmem_budget_bytes():
    """Generation-aware usable-VMEM budget (~48 MiB on v7x, ~96 MiB on v5e/v6e)."""
    phys = 64 * 1024 * 1024  # conservative default = v7x per-TC physical VMEM
    try:
        info = pltpu.get_tpu_info()
        phys = int(getattr(info, "vmem_capacity_bytes", phys)) or phys
    except Exception:
        pass
    return (phys * 3) // 4


def _pick_window_tile(n, fits):
    """Largest candidate window tile that fits the VMEM budget, preferring >=2
    blocks along the (parallel) window axis so v7x's 2nd TensorCore gets work.
    (No effect on v5e/v6e, which have a single TensorCore.)"""
    tn = 8
    for c in (512, 256, 128, 64, 32, 16, 8):
        if fits(c):
            tn = c
            break
    while tn > 8 and _cdiv(n, tn) < 2:
        tn //= 2
    return tn


def _linear_bias_kernel(p_ref, w_ref, b_ref, o_ref):
    """o(TN,D) = p(TN,K) @ w(K,D) + b(1,D): one long MXU contraction, f32 accum."""
    o_ref[...] = (
        jnp.dot(p_ref[...], w_ref[...], preferred_element_type=jnp.float32)
        + b_ref[...]
    ).astype(o_ref.dtype)


def _linear_bias_kernel_ktiled(p_ref, w_ref, b_ref, o_ref, acc_ref):
    """Fallback for huge K: acc(TN,D) += p(TN,TK) @ w(TK,D); bias on last step."""
    kb = pl.program_id(1)

    @pl.when(kb == 0)
    def _init():
        acc_ref[...] = jnp.zeros_like(acc_ref)

    acc_ref[...] += jnp.dot(p_ref[...], w_ref[...],
                            preferred_element_type=jnp.float32)

    @pl.when(kb == pl.num_programs(1) - 1)
    def _finalize():
        o_ref[...] = (acc_ref[...] + b_ref[...]).astype(o_ref.dtype)


def linear_over_patches_pallas(patches_nk, w, b2d):
    """(N, D) = patches(N, K) @ w(K, D) + b.  patches/w in bf16, f32 output."""
    n, k = patches_nk.shape
    kw_, d = w.shape
    assert kw_ == k and b2d.shape == (1, d)

    p_item = jnp.dtype(patches_nk.dtype).itemsize     # 2 for bf16
    w_item = jnp.dtype(w.dtype).itemsize              # 2 for bf16
    w_bytes = k * d * w_item
    budget = _vmem_budget_bytes()

    if 2 * w_bytes + 2 * 8 * k * p_item + 2 * 8 * d * 4 + d * 4 <= budget:
        # --- Single reduction step: weights fully VMEM-resident, no accumulator.
        tn = _pick_window_tile(
            n,
            lambda c: (2 * w_bytes + 2 * c * k * p_item + 2 * c * d * 4 + d * 4)
            <= budget)
        n_pad = _round_up(n, tn)
        p = patches_nk if n_pad == n else jnp.pad(
            patches_nk, ((0, n_pad - n), (0, 0)))

        est = 2 * w_bytes + 2 * tn * k * p_item + 2 * tn * d * 4 + d * 4
        out = pl.pallas_call(
            _linear_bias_kernel,
            out_shape=jax.ShapeDtypeStruct((n_pad, d), jnp.float32),
            grid_spec=pltpu.PrefetchScalarGridSpec(
                num_scalar_prefetch=0,
                grid=(n_pad // tn,),
                in_specs=[
                    pl.BlockSpec((tn, k), lambda nb: (nb, 0)),   # patch tile
                    pl.BlockSpec((k, d), lambda nb: (0, 0)),     # weights (resident)
                    pl.BlockSpec((1, d), lambda nb: (0, 0)),     # bias (resident)
                ],
                out_specs=pl.BlockSpec((tn, d), lambda nb: (nb, 0)),
            ),
            compiler_params=pltpu.CompilerParams(
                dimension_semantics=("parallel",),
                vmem_limit_bytes=int(min(budget, max(2 * est, 32 * 1024 * 1024))),
            ),
            cost_estimate=pl.CostEstimate(
                flops=2 * n_pad * k * d,
                transcendentals=0,
                bytes_accessed=n_pad * k * p_item + w_bytes + n_pad * d * 4 + d * 4,
            ),
        )(p, w, b2d)
        return out[:n]

    # --- Huge-K fallback: tile the reduction axis with a f32 VMEM accumulator.
    tn = _pick_window_tile(
        n,
        lambda c: (2 * c * 128 * p_item + 2 * 128 * d * w_item
                   + 3 * c * d * 4 + d * 4) <= budget)
    per_k = 2 * (tn * p_item + d * w_item)            # double-buffered, per unit tk
    fixed = 3 * tn * d * 4 + d * 4                    # out (x2 bufs) + acc + bias
    tk = int(max(128, min(((budget - fixed) // per_k) // 128 * 128,
                          _round_up(k, 128))))
    n_pad = _round_up(n, tn)
    k_pad = _round_up(k, tk)
    p = jnp.zeros((n_pad, k_pad), patches_nk.dtype).at[:n, :k].set(patches_nk)
    wp = jnp.zeros((k_pad, d), w.dtype).at[:k, :].set(w)

    est = fixed + per_k * tk
    out = pl.pallas_call(
        _linear_bias_kernel_ktiled,
        out_shape=jax.ShapeDtypeStruct((n_pad, d), jnp.float32),
        grid_spec=pltpu.PrefetchScalarGridSpec(
            num_scalar_prefetch=0,
            grid=(n_pad // tn, k_pad // tk),
            in_specs=[
                pl.BlockSpec((tn, tk), lambda nb, kb: (nb, kb)),
                pl.BlockSpec((tk, d), lambda nb, kb: (kb, 0)),
                pl.BlockSpec((1, d), lambda nb, kb: (0, 0)),
            ],
            out_specs=pl.BlockSpec((tn, d), lambda nb, kb: (nb, 0)),
            scratch_shapes=[pltpu.VMEM((tn, d), jnp.float32)],
        ),
        compiler_params=pltpu.CompilerParams(
            dimension_semantics=("parallel", "arbitrary"),
            vmem_limit_bytes=int(min(budget, max(2 * est, 32 * 1024 * 1024))),
        ),
        cost_estimate=pl.CostEstimate(
            flops=2 * n_pad * k_pad * d,
            transcendentals=0,
            bytes_accessed=n_pad * k_pad * p_item + k_pad * d * w_item
                           + n_pad * d * 4 + d * 4,
        ),
    )(p, wp, b2d)
    return out[:n]


def _extract_patches_nk(x, ks, stride, center):
    """im2col as a single XLA op, directly in (N, K) orientation.

    K is flattened in (C, kh, kw) row-major order (identical to torch.nn.Flatten
    of a (C, ks, ks) cut) and N = n_i * n_j is row-major over (ii, jj), matching
    the module's double loop.  Applies the ManualPooling `center=True` offsets.
    """
    _, c, h, w = x.shape
    iis = list(range(0, h - ks + 1, stride))
    jjs = list(range(0, w - ks + 1, stride))
    off_h = (h - (iis[-1] + ks)) // 2 if center else 0
    off_w = (w - (jjs[-1] + ks)) // 2 if center else 0
    x_win = x[:, :, off_h:off_h + iis[-1] + ks, off_w:off_w + jjs[-1] + ks]
    p = jax.lax.conv_general_dilated_patches(
        x_win,
        filter_shape=(ks, ks),
        window_strides=(stride, stride),
        padding="VALID",
        dimension_numbers=("NCHW", "OIHW", "NHWC"),
    )                                                  # (1, n_i, n_j, C*ks*ks)
    n_i, n_j = len(iis), len(jjs)
    kdim = c * ks * ks
    assert p.shape == (1, n_i, n_j, kdim)
    return p.reshape(n_i * n_j, kdim), n_i, n_j


def prepare_linear_params(w, b):
    """One-time packing OUTSIDE the jitted forward: bf16 weights, (1, D) f32 bias."""
    return jnp.asarray(w, jnp.bfloat16), jnp.asarray(b, jnp.float32).reshape(1, -1)


@functools.partial(jax.jit, static_argnums=(3, 4, 5))
def sliding_window_forward(x, w_bf16, b2d, kernel_size, stride, center=True):
    """ManualPooling over a Flatten+Linear kernel: (1,C,H,W) -> (1,D,n_i,n_j)."""
    assert x.ndim == 4 and x.shape[0] == 1, "batch-1 NCHW input expected"
    patches_nk, n_i, n_j = _extract_patches_nk(x, kernel_size, stride, center)
    patches_nk = patches_nk.astype(jnp.bfloat16)       # bf16 feeds the MXU at full rate
    out_nd = linear_over_patches_pallas(patches_nk, w_bf16, b2d)   # (N, D) f32
    d = w_bf16.shape[1]
    # (N, D) -> (1, D, n_i, n_j): tiny transpose handled by XLA outside the kernel.
    return out_nd.reshape(n_i, n_j, d).transpose(2, 0, 1)[None]


def _reference_forward(x, w, b, ks, stride, center=True):
    """Pure-JAX transliteration of ManualPooling.forward (loop-based patches)."""
    _, c, h, wdim = x.shape
    iis = list(range(0, h - ks + 1, stride))
    jjs = list(range(0, wdim - ks + 1, stride))
    off_h = (h - (iis[-1] + ks)) // 2 if center else 0
    off_w = (wdim - (jjs[-1] + ks)) // 2 if center else 0
    cuts = []
    for ii in iis:
        for jj in jjs:
            cuts.append(x[0, :, ii + off_h:ii + off_h + ks,
                          jj + off_w:jj + off_w + ks].reshape(-1))
    patches = jnp.stack(cuts, axis=0)          # (N, K) in torch-Flatten order
    out = patches @ w + b                      # (N, D)
    return out.T.reshape(1, w.shape[1], len(iis), len(jjs))


if __name__ == "__main__":
    # Small shapes consistent with ManualPooling(kernel_size=7, stride=pool_stride,
    # center=True) applied to a small feature map.
    C, H, W = 12, 18, 18
    KS, STRIDE = 7, 4          # iis = jjs = [0, 4, 8], center offset = 1, N = 9
    D = 32                     # output embedding dim of the Linear "kernel"
    K = C * KS * KS            # 588 flattened patch features

    key = jax.random.PRNGKey(0)
    kx, kw, kb = jax.random.split(key, 3)
    x = jax.random.normal(kx, (1, C, H, W), dtype=jnp.float32)
    w = jax.random.normal(kw, (K, D), dtype=jnp.float32) * 0.02
    b = jax.random.normal(kb, (D,), dtype=jnp.float32) * 0.01

    w_bf16, b2d = prepare_linear_params(w, b)   # one-time packing, outside the jit
    out = sliding_window_forward(x, w_bf16, b2d, KS, STRIDE, True)
    out = jax.block_until_ready(out)

    ref = _reference_forward(x, w, b, KS, STRIDE, True)
    assert out.shape == (1, D, 3, 3), out.shape
    # bf16 MXU operands with an f32 accumulator: ~0.5% relative error at K=588;
    # a layout/ordering bug would produce O(1) errors.
    assert jnp.allclose(out, ref, atol=2e-2, rtol=2e-2), \
        float(jnp.max(jnp.abs(out - ref)))

    print("KERNEL_OK")
</pallas_src>

<mosaic_0001>
module attributes {stable_mosaic.version = 11 : i64} {
  func.func @_linear_bias_kernel(%arg0: i32, %arg1: memref<8x588xbf16, #tpu.memory_space<vmem>>, %arg2: memref<588x32xbf16, #tpu.memory_space<vmem>>, %arg3: memref<1x32xf32, #tpu.memory_space<vmem>>, %arg4: memref<8x32xf32, #tpu.memory_space<vmem>>) attributes {dimension_semantics = [#tpu.dimension_semantics<parallel>], iteration_bounds = array<i64: 2>, scalar_prefetch = 0 : i64, scratch_operands = 0 : i64, tpu.core_type = #tpu.core_type<tc>, window_params = [{transform_indices = @transform_0, window_bounds = array<i64: 8, 588>}, {pipeline_mode = #tpu.pipeline_mode<synchronous>, transform_indices = @transform_1, window_bounds = array<i64: 588, 32>}, {pipeline_mode = #tpu.pipeline_mode<synchronous>, transform_indices = @transform_2, window_bounds = array<i64: 1, 32>}, {transform_indices = @transform_3, window_bounds = array<i64: 8, 32>}]} {
    %c0 = arith.constant 0 : index
    %c0_0 = arith.constant 0 : index
    %0 = vector.load %arg1[%c0, %c0_0] : memref<8x588xbf16, #tpu.memory_space<vmem>>, vector<8x588xbf16>
    %c0_1 = arith.constant 0 : index
    %c0_2 = arith.constant 0 : index
    %1 = vector.load %arg2[%c0_1, %c0_2] : memref<588x32xbf16, #tpu.memory_space<vmem>>, vector<588x32xbf16>
    %cst = arith.constant dense<0.000000e+00> : vector<8x32xf32>
    %2 = tpu.matmul %0, %1, %cst {dimension_numbers = #tpu.dot_dimension_numbers<[1], [0], [0], [1], [0, 0, 1, 1], [], []>} : vector<8x588xbf16>, vector<588x32xbf16>, vector<8x32xf32> -> vector<8x32xf32>
    %c0_3 = arith.constant 0 : index
    %c0_4 = arith.constant 0 : index
    %3 = vector.load %arg3[%c0_3, %c0_4] : memref<1x32xf32, #tpu.memory_space<vmem>>, vector<1x32xf32>
    %4 = vector.broadcast %3 : vector<1x32xf32> to vector<8x32xf32>
    %5 = arith.addf %2, %4 : vector<8x32xf32>
    %c0_5 = arith.constant 0 : index
    %c0_6 = arith.constant 0 : index
    %6 = vector.load %arg4[%c0_5, %c0_6] : memref<8x32xf32, #tpu.memory_space<vmem>>, vector<8x32xf32>
    tpu.vector_store %arg4[%c0_5, %c0_6], %5 {strides = array<i32>} : memref<8x32xf32, #tpu.memory_space<vmem>>, vector<8x32xf32>,
    return
  }
  func.func @transform_0(%arg0: i32) -> (i32, i32) {
    %c0_i32 = arith.constant 0 : i32
    %c0_i32_0 = arith.constant 0 : i32
    return %arg0, %c0_i32 : i32, i32
  }
  func.func @transform_1(%arg0: i32) -> (i32, i32) {
    %c0_i32 = arith.constant 0 : i32
    %c0_i32_0 = arith.constant 0 : i32
    %c0_i32_1 = arith.constant 0 : i32
    return %c0_i32, %c0_i32_0 : i32, i32
  }
  func.func @transform_2(%arg0: i32) -> (i32, i32) {
    %c0_i32 = arith.constant 0 : i32
    %c0_i32_0 = arith.constant 0 : i32
    %c0_i32_1 = arith.constant 0 : i32
    return %c0_i32, %c0_i32_0 : i32, i32
  }
  func.func @transform_3(%arg0: i32) -> (i32, i32) {
    %c0_i32 = arith.constant 0 : i32
    %c0_i32_0 = arith.constant 0 : i32
    return %arg0, %c0_i32 : i32, i32
  }
}

</mosaic_0001>

<bundles_post_ra>
// kernel: sliding_window_forward.1
= control target key start
LH: loop header
LB: loop body
LE: loop exit
PB: predicated region body
PF: predicated region fallthrough
CT: control target
= control target key end

     0   :  { %s875_s12 = smov 0   ;;  %s1019_s0 = inlined_call_operand.vmem [shape: bf16[16,588], index: 0, kind: input, shape index: {}]   ;;  %s1020_s1 = inlined_call_operand.vmem [shape: bf16[588,32], index: 1, kind: input, shape index: {}]   ;;  %s1021_s2 = inlined_call_operand.vmem [shape: f32[1,32], index: 2, kind: input, shape index: {}]   ;;  %s1022_s3 = inlined_call_operand.vmem [shape: f32[16,32], index: 3, kind: output, shape index: {}]  }
   0x1 LB: > { %s675_s13 = sadd.s32 4294967295, %s851_s12   ;;  %p679_p0 = scmp.ge.s32.totalorder %s851_s12, 1  ;;  %s851_s12 = sphi %s875_s12, %s13_s12  }
   0x2   : > { %p137_p1 = scmp.lt.s32.totalorder %s851_s12, 3 }
   0x4   : > { %p138_p2 = pnand %p679_p0, %p137_p1 }
   0x5   : > { %v803_v0 = vld [vmem:[%s1020_s1 + $0x40] sm:$0xff] (!%p138_p2)   ;;  %v807_v4 = vld [vmem:[%s1020_s1 + $0x48] sm:$0xff] (!%p138_p2)   ;;  %v811_v8 = vld [vmem:[%s1020_s1 + $0x50] sm:$0xff] (!%p138_p2)   ;;  %p160_p3 = scmp.lt.s32.totalorder (!%p138_p2), %s675_s13, 1  ;;  %v853_v35 = vmov (!%p138_p2), 0.0   ;;  %vm854_vm0 = vmmov (!%p138_p2), 0  }
   0x6   : > { %141 = sbr.rel (%p138_p2) target bundleno = 273 (0x111), region = 32  ;;  %v804_v1 = vld [vmem:[%s1020_s1] sm:$0xff] (!%p138_p2)   ;;  %728 = vmatprep.subr.bf16.mxu0 (!%p138_p2), %v803_v0  ;;  %v808_v5 = vld [vmem:[%s1020_s1 + $0x8] sm:$0xff] (!%p138_p2)   ;;  %v812_v9 = vld [vmem:[%s1020_s1 + $0x10] sm:$0xff] (!%p138_p2)   ;;  %vm496_vm1 = vcmask (!%p138_p2), 1045504   ;;  %vm492_vm2 = vcmask (!%p138_p2), 621568  }
   0x7   : > { %v805_v2 = vld [vmem:[%s1020_s1 + $0xc0] sm:$0xff] (!%p138_p2)   ;;  %729 = vmatpush3.bf16.msra.mxu0 (!%p138_p2), %v804_v1  ;;  %v809_v6 = vld [vmem:[%s1020_s1 + $0xc8] sm:$0xff] (!%p138_p2)   ;;  %v813_v10 = vld [vmem:[%s1020_s1 + $0xd0] sm:$0xff] (!%p138_p2)   ;;  %vm620_vm3 = vcmask (!%p138_p2), 261120  }
   0x8   : > { %v806_v3 = vld [vmem:[%s1020_s1 + $0x80] sm:$0xff] (!%p138_p2)   ;;  %750 = vmatprep.subr.bf16.mxu1 (!%p138_p2), %v805_v2  ;;  %730 = vmatprep.subr.bf16.mxu0 (!%p138_p2), %v807_v4  ;;  %v810_v7 = vld [vmem:[%s1020_s1 + $0x88] sm:$0xff] (!%p138_p2)   ;;  %v814_v11 = vld [vmem:[%s1020_s1 + $0x90] sm:$0xff] (!%p138_p2)  }
   0x9   : > { %751 = vmatpush3.bf16.msra.mxu1 (!%p138_p2), %v806_v3  ;;  %v815_v12 = vld [vmem:[%s1020_s1 + $0x58] sm:$0xff] (!%p138_p2)   ;;  %v819_v16 = vld [vmem:[%s1020_s1 + $0x60] sm:$0xff] (!%p138_p2)   ;;  %v823_v20 = vld [vmem:[%s1020_s1 + $0x68] sm:$0xff] (!%p138_p2)  }
   0xa   : > { %752 = vmatprep.subr.bf16.mxu1 (!%p138_p2), %v809_v6  ;;  %v816_v13 = vld [vmem:[%s1020_s1 + $0x18] sm:$0xff] (!%p138_p2)   ;;  %v820_v17 = vld [vmem:[%s1020_s1 + $0x20] sm:$0xff] (!%p138_p2)   ;;  %v824_v21 = vld [vmem:[%s1020_s1 + $0x28] sm:$0xff] (!%p138_p2)  }
   0xb   : > { %731 = vmatpush3.bf16.msra.mxu0 (!%p138_p2), %v808_v5  ;;  %v817_v14 = vld [vmem:[%s1020_s1 + $0xd8] sm:$0xff] (!%p138_p2)   ;;  %v821_v18 = vld [vmem:[%s1020_s1 + $0xe0] sm:$0xff] (!%p138_p2)   ;;  %v825_v22 = vld [vmem:[%s1020_s1 + $0xe8] sm:$0xff] (!%p138_p2)  }
   0xc   : > { %732 = vmatprep.subr.bf16.mxu0 (!%p138_p2), %v811_v8  ;;  %v818_v15 = vld [vmem:[%s1020_s1 + $0x98] sm:$0xff] (!%p138_p2)   ;;  %v822_v19 = vld [vmem:[%s1020_s1 + $0xa0] sm:$0xff] (!%p138_p2)   ;;  %v826_v23 = vld [vmem:[%s1020_s1 + $0xa8] sm:$0xff] (!%p138_p2)  }
   0xd   : > { %753 = vmatpush3.bf16.msra.mxu1 %v810_v7  ;;  %s1024_s13 = smov (!%p160_p3, %s675_s13), 1  ;;  %v827_v24 = vld [vmem:[%s1020_s1 + $0x70] sm:$0xff]   ;;  %v831_v28 = vld [vmem:[%s1020_s1 + $0x78] sm:$0xff]   ;;  %v840_v39 = vld [vmem:[%s1020_s1 + $0x100] sm:$0xff]  }
   0xe   : > { %754 = vmatprep.subr.bf16.mxu1 %v813_v10  ;;  %s792_s14 = smul.u32 20, %s1024_s13  ;;  %v828_v25 = vld [vmem:[%s1020_s1 + $0x30] sm:$0xff]   ;;  %v832_v29 = vld [vmem:[%s1020_s1 + $0x38] sm:$0xff]   ;;  %v841_v40 = vld [vmem:[%s1020_s1 + $0x108] sm:$0xff]   ;;  %s681_s19 = sshll.u32 %s1024_s13, 3 }
   0xf   : > { %733 = vmatpush3.bf16.msra.mxu0 %v812_v9  ;;  %v829_v26 = vld [vmem:[%s1020_s1 + $0xf0] sm:$0xff]   ;;  %v833_v30 = vld [vmem:[%s1020_s1 + $0xf8] sm:$0xff]   ;;  %v844_v43 = vld [vmem:[%s1020_s1 + $0x120] sm:$0x3f]   ;;  %s168_s22 = scalar_lea.vmem %s1022_s3, %s681_s19 }
  0x10   : > { %734 = vmatprep.subr.bf16.mxu0 %v815_v12  ;;  %v830_v27 = vld [vmem:[%s1020_s1 + $0xb0] sm:$0xff]   ;;  %s980_s25 = scalar_lea.vmem %s1019_s0, %s792_s14  ;;  %v837_v34 = vld [vmem:[%s1020_s1 + $0xb8] sm:$0xff]   ;;  %v498_v44 = vsel %vm496_vm1, %v844_v43, 0  ;;  %v682_v47 = vld [vmem:[%s1021_s2] ss:$0 sm:$0xff] }
  0x11   : > { %755 = vmatpush3.bf16.msra.mxu1 %v814_v11  ;;  %v170_v31 = vld [vmem:[%s980_s25] sm:$0xff]  ;;  %v171_v36 = vld [vmem:[%s980_s25 + $0x8] sm:$0xff]  ;;  %v842_v41 = vld [vmem:[%s1020_s1 + $0x110] sm:$0xff]  }
  0x12   : > { %756 = vmatprep.subr.bf16.mxu1 %v817_v14  ;;  %v683_v32 = vcombine.low %v170_v31, %v170_v31  ;;  %v684_v33 = vcombine.high %v170_v31, %v170_v31  ;;  %v685_v37 = vcombine.low %v171_v36, %v171_v36  ;;  %v686_v38 = vcombine.high %v171_v36, %v171_v36  ;;  %v843_v42 = vld [vmem:[%s1020_s1 + $0x118] sm:$0xff]   ;;  %v836_v45 = vld [vmem:[%s980_s25 + $0x10] ss:$0 sps:$4 sm:$0xff]  }
  0x13   : > { %735 = vmatpush3.bf16.msra.mxu0 %v816_v13 }
  0x14   : > { %736 = vmatprep.subr.bf16.mxu0 %v819_v16  ;;  %532 = vmatprep.mubr.bf16.mxu0 %v684_v33 }
  0x15   : > { %757 = vmatpush3.bf16.msra.mxu1 %v818_v15  ;;  %572 = vmatprep.mubr.bf16.mxu1 %v686_v38 }
  0x16   : > { %758 = vmatprep.subr.bf16.mxu1 %v821_v18 }
  0x17   : > { %737 = vmatpush3.bf16.msra.mxu0 %v820_v17 }
  0x18   : > { %738 = vmatprep.subr.bf16.mxu0 %v823_v20 }
  0x19   : > { %759 = vmatpush3.bf16.msra.mxu1 %v822_v19 }
  0x1a   : > { %760 = vmatprep.subr.bf16.mxu1 %v825_v22 }
  0x1b   : > { %739 = vmatpush3.bf16.msra.mxu0 %v824_v21 }
  0x1c   : > { %740 = vmatprep.subr.bf16.mxu0 %v827_v24 }
  0x1d   : > { %761 = vmatpush3.bf16.msra.mxu1 %v826_v23 }
  0x1e   : > { %762 = vmatprep.subr.bf16.mxu1 %v829_v26 }
  0x1f   : > { %741 = vmatpush3.bf16.msra.mxu0 %v828_v25 }
  0x20   : > { %742 = vmatprep.subr.bf16.mxu0 %v831_v28 }
  0x21   : > { %763 = vmatpush3.bf16.msra.mxu1 %v830_v27 }
  0x22   : > { %764 = vmatprep.subr.bf16.mxu1 %v833_v30 }
  0x23   : > { %743 = vmatpush3.bf16.msra.mxu0 %v832_v29 }
  0x24   : > { %778 = vmatprep.subr.bf16.mxu0 %v853_v35 }
  0x25   : > { %765 = vmatpush3.bf16.msra.mxu1 %v837_v34 }
  0x26   : > { %533 = vmatmul.mubr.bf16.vlgmr.msra.gmra.mrb[0].mxu0 %v683_v32 }
  0x27   : > { %779 = vmatpush3.bf16.msra.mxu0 %v840_v39  ;;  %788 = vmatprep.mubr.msk.bf16.mxu0 %vm854_vm0, %v853_v35 }
  0x28   : > { %573 = vmatmul.mubr.bf16.vlgmr.msra.gmra.mrb[0].mxu1 %v685_v37  ;;  %780 = vmatprep.subr.bf16.mxu0 %v853_v35 }
  0x2b   : > { %781 = vmatpush3.bf16.msra.mxu0 %v841_v40 }
  0x2c   : > { %782 = vmatprep.subr.bf16.mxu0 %v853_v35 }
  0x2f   : > { %783 = vmatpush3.bf16.msra.mxu0 %v842_v41 }
  0x30   : > { %784 = vmatprep.subr.bf16.mxu0 %v853_v35 }
  0x33   : > { %785 = vmatpush3.bf16.msra.mxu0 %v843_v42 }
  0x34   : > { %786 = vmatprep.subr.bf16.mxu0 %v853_v35 }
  0x37   : > { %787 = vmatpush3.bf16.msra.mxu0 %v498_v44 }
  0x3a   : > { %789 = vmatmul.mubr.msk.bf16.vlgmr.msra.gmra.mrb[4].mxu0 %vm492_vm2, %v836_v45 }
  0xf9   : > { %v744_v46 = vpop.f32.mrb[0].mxu0 }
  0xfa   : > { %v745_v48 = vpop.f32.mrb[1].mxu0 }
  0xfb   : > { %v746_v49 = vadd.f32 %v745_v48, %v744_v46  ;;  %v747_v50 = vpop.f32.mrb[2].mxu0  ;;  %v766_v51 = vpop.f32.mrb[0].mxu1 }
  0xfc   : > { %v748_v52 = vpop.f32.mrb[3].mxu0  ;;  %v767_v53 = vpop.f32.mrb[1].mxu1 }
  0xfd   : > { %v535_v54 = vadd.f32 %v746_v49, %v682_v47  ;;  %v768_v55 = vadd.f32 %v767_v53, %v766_v51  ;;  %v769_v56 = vpop.f32.mrb[2].mxu1 }
  0xfe   : > { %v770_v57 = vpop.f32.mrb[3].mxu1 }
  0xff   : > { %v575_v58 = vadd.f32 %v768_v55, %v535_v54 }
 0x10d   : > { %v614_v59 = vpop.f32.mrb[4].mxu0 }
 0x10e   : > { %v615_v60 = vadd.f32 %v614_v59, %v575_v58  ;;  %v790_v61 = vpop.f32.mrb[5].mxu0 }
 0x10f   : > { %v617_v62 = vpop.f32.mrb[6].mxu0 }
 0x110   : > { %621 = vst.msk [vmem:[%s168_s22] sm:$0xff] %vm620_vm3, %v615_v60  ;;  %v791_v63 = vpop.f32.mrb[7].mxu0 }
 0x111 PF: > { %s13_s12 = sadd.s32 1, %s851_s12  }
 0x112   : > { %p10_p4 = scmp.ge.s32.totalorder %s13_s12, 4  }
 0x114   :  { %12 = sbr.rel (!%p10_p4) target bundleno = 1 (0x1), region = 62 }

</bundles_post_ra>
